<compile_context>
chip_gen: v7x
topology: tpu7x:2x2x1
jax: 0.10.0
libtpu: 0.0.40
codegen_flags: <defaults>
</compile_context>

<pallas_src>
import jax
import jax.numpy as jnp
import numpy as np
from jax.experimental import pallas as pl
from jax.experimental.pallas import tpu as pltpu

_HI = jax.lax.Precision.HIGHEST


def _fused_convt_bn_lrelu_kernel(x_ref, w_ref, b_ref, o_ref):
    # Hot path: per-voxel matmul on the MXU; BN scale is pre-folded into w/b,
    # so the epilogue is just bias add + LeakyReLU(0.01).
    y = jnp.dot(x_ref[...], w_ref[...], preferred_element_type=jnp.float32)
    y = y + b_ref[...]
    o_ref[...] = jnp.where(y >= 0.0, y, 0.01 * y).astype(o_ref.dtype)


def conv_transpose_block(x_ncdhw, weight, bias, gamma, beta, eps=1e-5,
                         tm_rows=1024, compute_dtype=jnp.float32):
    """Forward pass of the PyTorch ConvTranspose module (training-mode BN).

    compute_dtype=jnp.bfloat16 can be used on v6e/v7x to halve matmul-input
    read traffic (accumulation and output stay f32); default f32 keeps exact
    parity with the PyTorch reference.
    """
    N, Cin, D, H, W = x_ncdhw.shape
    Cout = weight.shape[1]
    kD = kH = kW = 2
    taps = kD * kH * kW                 # 8 non-overlapping output taps per voxel
    K = taps * Cout                     # per-voxel output columns
    M = N * D * H * W                   # input voxels
    f32 = jnp.float32

    # ---- channels-last 2-D view of the input -------------------------------
    x2 = jnp.transpose(x_ncdhw, (0, 2, 3, 4, 1)).reshape(M, Cin).astype(f32)

    # weight (Cin, Cout, kD, kH, kW) -> (Cin, taps*Cout), Cout fastest:
    # column k corresponds to channel k % Cout.
    wm = jnp.transpose(weight, (0, 2, 3, 4, 1)).reshape(Cin, K).astype(f32)
    b_col = jnp.tile(bias.astype(f32), taps)                      # (K,)

    # ---- analytic BatchNorm batch statistics (training mode, biased var) ---
    mean_x = jnp.mean(x2, axis=0)                                 # (Cin,)
    xc = x2 - mean_x
    cov_x = jnp.einsum("mc,md->cd", xc, xc, precision=_HI) / M    # (Cin, Cin)
    mean_tap = jnp.einsum("c,ck->k", mean_x, wm, precision=_HI) + b_col   # (K,)
    var_tap = jnp.einsum("ck,cd,dk->k", wm, cov_x, wm, precision=_HI)     # (K,)
    mt = mean_tap.reshape(taps, Cout)
    vt = var_tap.reshape(taps, Cout)
    mean_ch = jnp.mean(mt, axis=0)                                # (Cout,)
    # law of total variance over the 8 equal-size tap groups (no cancellation)
    var_ch = jnp.mean(vt + jnp.square(mt - mean_ch), axis=0)      # (Cout,) biased
    scale = gamma.astype(f32) * jax.lax.rsqrt(var_ch + eps)       # (Cout,)
    shift = beta.astype(f32) - mean_ch * scale                    # (Cout,)

    # ---- fold BN affine into the matmul weight / bias ----------------------
    scale_col = jnp.tile(scale, taps)                             # (K,)
    shift_col = jnp.tile(shift, taps)                             # (K,)
    w_fold = wm * scale_col[None, :]                              # (Cin, K)
    b_fold = b_col * scale_col + shift_col                        # (K,)

    # ---- pack rows so the output lane dim is a multiple of 128 -------------
    P = 1
    if K < 128 and 128 % K == 0:
        P = 128 // K
        while M % P != 0 and P > 1:
            P //= 2
    L = P * K                    # output lanes per packed row (>=128 when possible)
    Ci = P * Cin                 # packed contraction width
    Mp = M // P

    x_in = x2.reshape(Mp, Ci)
    w_blk = jnp.kron(jnp.eye(P, dtype=f32), w_fold)               # block-diag (Ci, L)
    b_blk = jnp.tile(b_fold, P).reshape(1, L)

    if compute_dtype != f32:
        x_in = x_in.astype(compute_dtype)
        w_blk = w_blk.astype(compute_dtype)

    # ---- row tiling: big tiles, pad (never "one giant block") --------------
    TM = min(tm_rows, Mp)
    n_tiles = pl.cdiv(Mp, TM)
    Mp_pad = n_tiles * TM
    if Mp_pad != Mp:
        x_in = jnp.pad(x_in, ((0, Mp_pad - Mp), (0, 0)))

    # double-buffered tiles; stay well under the v7x 64 MiB VMEM budget
    itemsize = jnp.dtype(compute_dtype).itemsize
    vmem_bytes = 2 * (TM * Ci * itemsize + Ci * L * itemsize
                      + L * 4 + TM * L * 4) + (1 << 20)
    vmem_bytes = int(min(max(vmem_bytes, 4 << 20), 48 << 20))

    # NOTE: if Cin grows large in production, add a K-grid reduction axis over
    # Cin with a VMEM f32 accumulator (axis marked "arbitrary", placed last)
    # instead of loading the full (Ci, L) weight block per step.
    y2p = pl.pallas_call(
        _fused_convt_bn_lrelu_kernel,
        out_shape=jax.ShapeDtypeStruct((Mp_pad, L), f32),
        grid=(n_tiles,),
        in_specs=[
            pl.BlockSpec((TM, Ci), lambda i: (i, 0)),
            pl.BlockSpec((Ci, L), lambda i: (0, 0)),   # constant block: DMA'd once
            pl.BlockSpec((1, L), lambda i: (0, 0)),
        ],
        out_specs=pl.BlockSpec((TM, L), lambda i: (i, 0)),
        compiler_params=pltpu.CompilerParams(
            dimension_semantics=("parallel",),          # megacore sharding on v7x
            vmem_limit_bytes=vmem_bytes,
        ),
    )(x_in, w_blk, b_blk)

    y2 = y2p[:Mp].reshape(M, K)

    # ---- scatter the 2x2x2 taps into doubled spatial dims, back to NCDHW ---
    # (single XLA transpose over the big tensor; required for NCDHW output)
    y = y2.reshape(N, D, H, W, kD, kH, kW, Cout)
    y = jnp.transpose(y, (0, 7, 1, 4, 2, 5, 3, 6))
    return y.reshape(N, Cout, kD * D, kH * H, kW * W)


def _reference(x, weight, bias, gamma, beta, eps=1e-5):
    # Pure-JAX reference with direct batch statistics (PyTorch training-mode BN).
    N, Cin, D, H, W = x.shape
    Cout = weight.shape[1]
    y = jnp.einsum("ncdhw,coabe->nodahbwe", x, weight)
    y = y.reshape(N, Cout, 2 * D, 2 * H, 2 * W) + bias.reshape(1, Cout, 1, 1, 1)
    mean = jnp.mean(y, axis=(0, 2, 3, 4), keepdims=True)
    var = jnp.mean(jnp.square(y - mean), axis=(0, 2, 3, 4), keepdims=True)
    yn = (y - mean) / jnp.sqrt(var + eps)
    yn = yn * gamma.reshape(1, Cout, 1, 1, 1) + beta.reshape(1, Cout, 1, 1, 1)
    return jnp.where(yn >= 0.0, yn, 0.01 * yn)


if __name__ == "__main__":
    key = jax.random.PRNGKey(0)
    k_x, k_w, k_b, k_g, k_beta = jax.random.split(key, 5)

    N, Cin, Cout, D, H, W = 2, 4, 8, 8, 8, 8
    x = jax.random.normal(k_x, (N, Cin, D, H, W), dtype=jnp.float32)
    # ConvTranspose3d weight shape: (in_channels, out_channels, kD, kH, kW)
    weight = 0.1 * jax.random.normal(k_w, (Cin, Cout, 2, 2, 2), dtype=jnp.float32)
    bias = 0.1 * jax.random.normal(k_b, (Cout,), dtype=jnp.float32)
    gamma = 1.0 + 0.1 * jax.random.normal(k_g, (Cout,), dtype=jnp.float32)
    beta = 0.1 * jax.random.normal(k_beta, (Cout,), dtype=jnp.float32)

    fwd = jax.jit(conv_transpose_block)
    out = jax.block_until_ready(fwd(x, weight, bias, gamma, beta))

    ref = jax.block_until_ready(_reference(x, weight, bias, gamma, beta))
    assert out.shape == (N, Cout, 2 * D, 2 * H, 2 * W), out.shape
    np.testing.assert_allclose(np.asarray(out), np.asarray(ref), atol=1e-4, rtol=1e-4)

    print("KERNEL_OK")
</pallas_src>

<mosaic_0001>
module attributes {stable_mosaic.version = 11 : i64} {
  func.func @_fused_convt_bn_lrelu_kernel(%arg0: i32, %arg1: memref<512x8xf32, #tpu.memory_space<vmem>>, %arg2: memref<8x128xf32, #tpu.memory_space<vmem>>, %arg3: memref<1x128xf32, #tpu.memory_space<vmem>>, %arg4: memref<512x128xf32, #tpu.memory_space<vmem>>) attributes {dimension_semantics = [#tpu.dimension_semantics<parallel>], iteration_bounds = array<i64: 1>, scalar_prefetch = 0 : i64, scratch_operands = 0 : i64, tpu.core_type = #tpu.core_type<tc>, window_params = [{transform_indices = @transform_0, window_bounds = array<i64: 512, 8>}, {pipeline_mode = #tpu.pipeline_mode<synchronous>, transform_indices = @transform_1, window_bounds = array<i64: 8, 128>}, {pipeline_mode = #tpu.pipeline_mode<synchronous>, transform_indices = @transform_2, window_bounds = array<i64: 1, 128>}, {transform_indices = @transform_3, window_bounds = array<i64: 512, 128>}]} {
    %c0 = arith.constant 0 : index
    %c0_0 = arith.constant 0 : index
    %0 = vector.load %arg1[%c0, %c0_0] : memref<512x8xf32, #tpu.memory_space<vmem>>, vector<512x8xf32>
    %c0_1 = arith.constant 0 : index
    %c0_2 = arith.constant 0 : index
    %1 = vector.load %arg2[%c0_1, %c0_2] : memref<8x128xf32, #tpu.memory_space<vmem>>, vector<8x128xf32>
    %cst = arith.constant dense<0.000000e+00> : vector<512x128xf32>
    %2 = tpu.matmul %0, %1, %cst {dimension_numbers = #tpu.dot_dimension_numbers<[1], [0], [0], [1], [0, 0, 1, 1], [], []>} : vector<512x8xf32>, vector<8x128xf32>, vector<512x128xf32> -> vector<512x128xf32>
    %c0_3 = arith.constant 0 : index
    %c0_4 = arith.constant 0 : index
    %3 = vector.load %arg3[%c0_3, %c0_4] : memref<1x128xf32, #tpu.memory_space<vmem>>, vector<1x128xf32>
    %4 = vector.broadcast %3 : vector<1x128xf32> to vector<512x128xf32>
    %5 = arith.addf %2, %4 : vector<512x128xf32>
    %cst_5 = arith.constant 0.000000e+00 : f32
    %6 = vector.broadcast %cst_5 : f32 to vector<512x128xf32>
    %7 = arith.cmpf oge, %5, %6 : vector<512x128xf32>
    %cst_6 = arith.constant 0.00999999977 : f32
    %8 = vector.broadcast %cst_6 : f32 to vector<512x128xf32>
    %9 = arith.mulf %8, %5 : vector<512x128xf32>
    %10 = arith.select %7, %5, %9 : vector<512x128xi1>, vector<512x128xf32>
    %c0_7 = arith.constant 0 : index
    %c0_8 = arith.constant 0 : index
    %11 = vector.load %arg4[%c0_7, %c0_8] : memref<512x128xf32, #tpu.memory_space<vmem>>, vector<512x128xf32>
    tpu.vector_store %arg4[%c0_7, %c0_8], %10 {strides = array<i32>} : memref<512x128xf32, #tpu.memory_space<vmem>>, vector<512x128xf32>,
    return
  }
  func.func @transform_0(%arg0: i32) -> (i32, i32) {
    %c0_i32 = arith.constant 0 : i32
    %c0_i32_0 = arith.constant 0 : i32
    return %arg0, %c0_i32 : i32, i32
  }
  func.func @transform_1(%arg0: i32) -> (i32, i32) {
    %c0_i32 = arith.constant 0 : i32
    %c0_i32_0 = arith.constant 0 : i32
    %c0_i32_1 = arith.constant 0 : i32
    return %c0_i32, %c0_i32_0 : i32, i32
  }
  func.func @transform_2(%arg0: i32) -> (i32, i32) {
    %c0_i32 = arith.constant 0 : i32
    %c0_i32_0 = arith.constant 0 : i32
    %c0_i32_1 = arith.constant 0 : i32
    return %c0_i32, %c0_i32_0 : i32, i32
  }
  func.func @transform_3(%arg0: i32) -> (i32, i32) {
    %c0_i32 = arith.constant 0 : i32
    %c0_i32_0 = arith.constant 0 : i32
    return %arg0, %c0_i32 : i32, i32
  }
}

</mosaic_0001>

<bundles_post_ra>
// kernel: tile.24
= control target key start
LH: loop header
LB: loop body
LE: loop exit
PB: predicated region body
PF: predicated region fallthrough
CT: control target
= control target key end

     0   :  { %2 = vsyncpa [#allocation1], 0  ;;  %s44_s6 = smov [#allocation0]   ;;  %s70_s0 = inlined_call_operand.hbm [shape: f32[8], index: 0, kind: input, shape index: {}]   ;;  %s71_s1 = inlined_call_operand.vmem [shape: f32[8,8], index: 1, kind: output, shape index: {}]  }
   0x1   :  { %s9_s7 = sshll.u32 %s44_s6, 4  ;;  %s20_s10 = scalar_lea.hbm %s70_s0, 16  ;;  %s10_s7 = int_to_ptr.vmem [resolvable:$true] %s9_s7 }
   0x2   :  { %p21_p0 = scmp.ne.s32.totalorder %s70_s0, %s20_s10  ;;  %p24_p1 = scmp.lt.u32.totalorder %s20_s10, %s70_s0 }
   0x4   :  { %p26_p2 = pnand %p24_p1, %p21_p0 }
   0x6   :  { %29 = shalt.err (!%p26_p2)
}
   0x7   :  { %s30_s15 = scalar_lea.vmem %s10_s7, 16  ;;  %s34_s16 = scalar_lea.vmem %s10_s7, 32 }
   0x8   :  { %p31_p3 = scmp.ne.s32.totalorder %s10_s7, %s30_s15  ;;  %p35_p4 = scmp.lt.s32.totalorder %s10_s7, %s10_s7 }
   0x9   :  { %p36_p5 = scmp.lt.s32.totalorder %s34_s16, %s30_s15 }
   0xb   :  { %p37_p6 = por %p36_p5, %p35_p4 }
   0xd   :  { %p38_p7 = pnand %p37_p6, %p31_p3 }
   0xf   :  { %41 = shalt.err (!%p38_p7)
}
  0x10   :  { %12 = dma.hbm_to_vmem [thread:$0]  %s70_s0, 16, %s10_s7, [#allocation1]  }
  0x11   :  { %42 = dma.done.wait [#allocation1], 16  }
  0x12   :  { %43 = vsyncadd [#allocation1], 4294967280  ;;  %v16_v0 = vld [vmem:[#allocation0] ss:$0 sm:$0xff] }
  0x13   :  { %17 = vst [vmem:[%s71_s1] sm:$0xff] %v16_v0 }
  0x14   :  { %18 = vsyncpa [#allocation1], 1 }

// kernel: tile.34
= control target key start
LH: loop header
LB: loop body
LE: loop exit
PB: predicated region body
PF: predicated region fallthrough
CT: control target
= control target key end

     0   :  { %s22_s0 = inlined_call_operand.vmem [shape: f32[8], index: 0, kind: input, shape index: {}]   ;;  %s23_s1 = inlined_call_operand.vmem [shape: f32[8,8], index: 1, kind: output, shape index: {}]  }
   0x1   :  { %v4_v0 = vld [vmem:[%s22_s0] ss:$0 sm:$0xff] }
   0x2   :  { %5 = vst [vmem:[%s23_s1] sm:$0xff] %v4_v0 }

// kernel: tile.40
= control target key start
LH: loop header
LB: loop body
LE: loop exit
PB: predicated region body
PF: predicated region fallthrough
CT: control target
= control target key end

     0   :  { %s22_s0 = inlined_call_operand.vmem [shape: f32[64], index: 0, kind: input, shape index: {}]   ;;  %s23_s1 = inlined_call_operand.vmem [shape: f32[2,64], index: 1, kind: output, shape index: {}]  }
   0x1   :  { %v4_v0 = vld [vmem:[%s22_s0] ss:$0 sm:$0xff] }
   0x2   :  { %5 = vst [vmem:[%s23_s1] sm:$0x3] %v4_v0 }

// kernel: tile.41
= control target key start
LH: loop header
LB: loop body
LE: loop exit
PB: predicated region body
PF: predicated region fallthrough
CT: control target
= control target key end

     0   :  { %vm7_vm0 = vcmask 523264   ;;  %vm13_vm1 = vcmask 1048064   ;;  %s39_s0 = inlined_call_operand.vmem [shape: f32[2,64], index: 0, kind: input, shape index: {}]   ;;  %s40_s1 = inlined_call_operand.vmem [shape: f32[1,128], index: 1, kind: output, shape index: {}]  }
   0x1   :  { %v4_v0 = vld [vmem:[%s39_s0] sm:$0x3]  ;;  %s22_s0 = smov 64  }
   0x2   :  { %5 = vst [vmem:[#allocation1] sm:$0x3] %v4_v0 }
   0x9   :  { %v10_v1 = vld [vmem:[#allocation1 + $0x1] sm:$0x1]   ;;  %v6_v2 = vld [vmem:[#allocation1] sm:$0x1]  }
   0xa   :  { %11 = vrot.lane.b32.xlu0 %v10_v1, %s22_s0  ;;  %8 = vst.msk [vmem:[#allocation0] sm:$0x1] %vm7_vm0, %v6_v2  }
  0x7c   :  { %v12_v3 = vpop.permute.xlu0 %11  }
  0x7d   :  { %14 = vst.msk [vmem:[#allocation0] sm:$0x1] %vm13_vm1, %v12_v3  }
  0x84   :  { %v18_v4 = vld [vmem:[#allocation0] sm:$0x1] }
  0x85   :  { %20 = vst [vmem:[%s40_s1] sm:$0x1] %v18_v4 }

// kernel: conv_transpose_block.1
= control target key start
LH: loop header
LB: loop body
LE: loop exit
PB: predicated region body
PF: predicated region fallthrough
CT: control target
= control target key end

     0   :  { %vm86_vm0 = vcmask 64512   ;;  %s1694_s1 = inlined_call_operand.vmem [shape: f32[8,128], index: 1, kind: input, shape index: {}]   ;;  %s1695_s0 = inlined_call_operand.vmem [shape: f32[512,8], index: 0, kind: input, shape index: {}]   ;;  %s1696_s2 = inlined_call_operand.vmem [shape: f32[1,128], index: 2, kind: input, shape index: {}]   ;;  %s1697_s3 = inlined_call_operand.vmem [shape: f32[512,128], index: 3, kind: output, shape index: {}]  }
   0x1   :  { %v78_v0 = vld [vmem:[%s1694_s1] sm:$0xff]  ;;  %v15_v3 = vld [vmem:[%s1695_s0 + $0x8] sm:$0xff]  ;;  %v16_v5 = vld [vmem:[%s1695_s0 + $0x10] sm:$0xff] }
   0x2   :  { %v14_v1 = vld [vmem:[%s1695_s0] sm:$0xff]  ;;  %1054 = vmatprep.subr.mxu0 %v78_v0  ;;  %1152 = vmatprep.subr.mxu1 %v78_v0  ;;  %v47_v4 = vld [vmem:[%s1695_s0 + $0x108] sm:$0xff]  ;;  %v48_v6 = vld [vmem:[%s1695_s0 + $0x110] sm:$0xff] }
   0x3   :  { %v46_v2 = vld [vmem:[%s1695_s0 + $0x100] sm:$0xff]  ;;  %1055 = vmatpush3.msra.mxu0 %v78_v0  ;;  %1153 = vmatpush3.msra.mxu1 %v78_v0  ;;  %v17_v7 = vld [vmem:[%s1695_s0 + $0x18] sm:$0xff]  ;;  %v19_v11 = vld [vmem:[%s1695_s0 + $0x28] sm:$0xff] }
   0x4   :  { %1056 = vmatprep.mubr.msk.f32.mxu0 %vm86_vm0, %v14_v1  ;;  %1104 = vmatprep.mubr.msk.f32.mxu1 %vm86_vm0, %v46_v2  ;;  %v49_v8 = vld [vmem:[%s1695_s0 + $0x118] sm:$0xff]  ;;  %v18_v9 = vld [vmem:[%s1695_s0 + $0x20] sm:$0xff]  ;;  %v51_v12 = vld [vmem:[%s1695_s0 + $0x128] sm:$0xff] }
   0x5   :  { %1057 = vmatmul.mubr.msk.f32.vlgmr.msra.gmra.mrb[0].mxu0 %vm86_vm0, %v15_v3  ;;  %1105 = vmatmul.mubr.msk.f32.vlgmr.msra.gmra.mrb[0].mxu1 %vm86_vm0, %v47_v4  ;;  %v50_v10 = vld [vmem:[%s1695_s0 + $0x120] sm:$0xff]  ;;  %v20_v13 = vld [vmem:[%s1695_s0 + $0x30] sm:$0xff]  ;;  %v21_v15 = vld [vmem:[%s1695_s0 + $0x38] sm:$0xff] }
   0x6   :  { %1059 = vmatprep.mubr.msk.f32.mxu0 %vm86_vm0, %v16_v5  ;;  %1107 = vmatprep.mubr.msk.f32.mxu1 %vm86_vm0, %v48_v6  ;;  %v52_v14 = vld [vmem:[%s1695_s0 + $0x130] sm:$0xff]  ;;  %v53_v16 = vld [vmem:[%s1695_s0 + $0x138] sm:$0xff]  ;;  %v22_v17 = vld [vmem:[%s1695_s0 + $0x40] sm:$0xff] }
   0x7   :  { %v54_v18 = vld [vmem:[%s1695_s0 + $0x140] sm:$0xff]  ;;  %v23_v19 = vld [vmem:[%s1695_s0 + $0x48] sm:$0xff]  ;;  %v24_v21 = vld [vmem:[%s1695_s0 + $0x50] sm:$0xff] }
   0x8   :  { %v55_v20 = vld [vmem:[%s1695_s0 + $0x148] sm:$0xff]  ;;  %v56_v22 = vld [vmem:[%s1695_s0 + $0x150] sm:$0xff]  ;;  %v25_v23 = vld [vmem:[%s1695_s0 + $0x58] sm:$0xff] }
   0x9   :  { %1060 = vmatmul.mubr.msk.f32.gmra.mrb[2].mxu0 %vm86_vm0, %v17_v7  ;;  %1108 = vmatmul.mubr.msk.f32.gmra.mrb[2].mxu1 %vm86_vm0, %v49_v8  ;;  %v57_v24 = vld [vmem:[%s1695_s0 + $0x158] sm:$0xff]  ;;  %v26_v25 = vld [vmem:[%s1695_s0 + $0x60] sm:$0xff]  ;;  %v27_v27 = vld [vmem:[%s1695_s0 + $0x68] sm:$0xff] }
   0xa   :  { %1062 = vmatprep.mubr.msk.f32.mxu0 %vm86_vm0, %v18_v9  ;;  %1110 = vmatprep.mubr.msk.f32.mxu1 %vm86_vm0, %v50_v10  ;;  %v58_v26 = vld [vmem:[%s1695_s0 + $0x160] sm:$0xff]  ;;  %v59_v28 = vld [vmem:[%s1695_s0 + $0x168] sm:$0xff]  ;;  %v28_v29 = vld [vmem:[%s1695_s0 + $0x70] sm:$0xff] }
   0xb   :  { %v60_v30 = vld [vmem:[%s1695_s0 + $0x170] sm:$0xff]  ;;  %v29_v31 = vld [vmem:[%s1695_s0 + $0x78] sm:$0xff]  ;;  %v30_v33 = vld [vmem:[%s1695_s0 + $0x80] sm:$0xff] }
   0xc   :  { %v61_v32 = vld [vmem:[%s1695_s0 + $0x178] sm:$0xff]  ;;  %v62_v34 = vld [vmem:[%s1695_s0 + $0x180] sm:$0xff]  ;;  %v31_v35 = vld [vmem:[%s1695_s0 + $0x88] sm:$0xff] }
   0xd   :  { %1063 = vmatmul.mubr.msk.f32.gmra.mrb[4].mxu0 %vm86_vm0, %v19_v11  ;;  %1111 = vmatmul.mubr.msk.f32.gmra.mrb[4].mxu1 %vm86_vm0, %v51_v12  ;;  %v63_v36 = vld [vmem:[%s1695_s0 + $0x188] sm:$0xff]  ;;  %v32_v37 = vld [vmem:[%s1695_s0 + $0x90] sm:$0xff]  ;;  %v33_v39 = vld [vmem:[%s1695_s0 + $0x98] sm:$0xff] }
   0xe   :  { %1065 = vmatprep.mubr.msk.f32.mxu0 %vm86_vm0, %v20_v13  ;;  %1113 = vmatprep.mubr.msk.f32.mxu1 %vm86_vm0, %v52_v14  ;;  %v64_v38 = vld [vmem:[%s1695_s0 + $0x190] sm:$0xff]  ;;  %v65_v40 = vld [vmem:[%s1695_s0 + $0x198] sm:$0xff]  ;;  %v34_v41 = vld [vmem:[%s1695_s0 + $0xa0] sm:$0xff] }
   0xf   :  { %v66_v42 = vld [vmem:[%s1695_s0 + $0x1a0] sm:$0xff]  ;;  %v35_v43 = vld [vmem:[%s1695_s0 + $0xa8] sm:$0xff]  ;;  %v36_v45 = vld [vmem:[%s1695_s0 + $0xb0] sm:$0xff] }
  0x10   :  { %v67_v44 = vld [vmem:[%s1695_s0 + $0x1a8] sm:$0xff]  ;;  %v68_v46 = vld [vmem:[%s1695_s0 + $0x1b0] sm:$0xff]  ;;  %v37_v47 = vld [vmem:[%s1695_s0 + $0xb8] sm:$0xff] }
  0x11   :  { %1066 = vmatmul.mubr.msk.f32.gmra.mrb[6].mxu0 %vm86_vm0, %v21_v15  ;;  %1114 = vmatmul.mubr.msk.f32.gmra.mrb[6].mxu1 %vm86_vm0, %v53_v16  ;;  %v69_v48 = vld [vmem:[%s1695_s0 + $0x1b8] sm:$0xff]  ;;  %v38_v49 = vld [vmem:[%s1695_s0 + $0xc0] sm:$0xff]  ;;  %v39_v51 = vld [vmem:[%s1695_s0 + $0xc8] sm:$0xff] }
  0x12   :  { %1068 = vmatprep.mubr.msk.f32.mxu0 %vm86_vm0, %v22_v17  ;;  %1116 = vmatprep.mubr.msk.f32.mxu1 %vm86_vm0, %v54_v18  ;;  %v70_v50 = vld [vmem:[%s1695_s0 + $0x1c0] sm:$0xff]  ;;  %v71_v52 = vld [vmem:[%s1695_s0 + $0x1c8] sm:$0xff]  ;;  %v40_v53 = vld [vmem:[%s1695_s0 + $0xd0] sm:$0xff] }
  0x13   :  { %v72_v54 = vld [vmem:[%s1695_s0 + $0x1d0] sm:$0xff]  ;;  %v41_v55 = vld [vmem:[%s1695_s0 + $0xd8] sm:$0xff]  ;;  %v42_v57 = vld [vmem:[%s1695_s0 + $0xe0] sm:$0xff] }
  0x14   :  { %v73_v56 = vld [vmem:[%s1695_s0 + $0x1d8] sm:$0xff]  ;;  %v74_v58 = vld [vmem:[%s1695_s0 + $0x1e0] sm:$0xff]  ;;  %v43_v59 = vld [vmem:[%s1695_s0 + $0xe8] sm:$0xff] }
  0x15   :  { %1069 = vmatmul.mubr.msk.f32.gmra.mrb[8].mxu0 %vm86_vm0, %v23_v19  ;;  %1117 = vmatmul.mubr.msk.f32.gmra.mrb[8].mxu1 %vm86_vm0, %v55_v20  ;;  %v75_v60 = vld [vmem:[%s1695_s0 + $0x1e8] sm:$0xff]  ;;  %v44_v61 = vld [vmem:[%s1695_s0 + $0xf0] sm:$0xff]  ;;  %v45_v63 = vld [vmem:[%s1695_s0 + $0xf8] sm:$0xff] }
  0x16   :  { %1071 = vmatprep.mubr.msk.f32.mxu0 %vm86_vm0, %v24_v21  ;;  %1119 = vmatprep.mubr.msk.f32.mxu1 %vm86_vm0, %v56_v22  ;;  %v76_v62 = vld [vmem:[%s1695_s0 + $0x1f0] sm:$0xff]  ;;  %v77_v0 = vld [vmem:[%s1695_s0 + $0x1f8] sm:$0xff]  ;;  %v1436_v1 = vld [vmem:[%s1696_s2] ss:$0 sm:$0xff] }
  0x19   :  { %1072 = vmatmul.mubr.msk.f32.gmra.mrb[10].mxu0 %vm86_vm0, %v25_v23  ;;  %1120 = vmatmul.mubr.msk.f32.gmra.mrb[10].mxu1 %vm86_vm0, %v57_v24 }
  0x1a   :  { %1074 = vmatprep.mubr.msk.f32.mxu0 %vm86_vm0, %v26_v25  ;;  %1122 = vmatprep.mubr.msk.f32.mxu1 %vm86_vm0, %v58_v26 }
  0x1d   :  { %1075 = vmatmul.mubr.msk.f32.gmra.mrb[12].mxu0 %vm86_vm0, %v27_v27  ;;  %1123 = vmatmul.mubr.msk.f32.gmra.mrb[12].mxu1 %vm86_vm0, %v59_v28 }
  0x1e   :  { %1077 = vmatprep.mubr.msk.f32.mxu0 %vm86_vm0, %v28_v29  ;;  %1125 = vmatprep.mubr.msk.f32.mxu1 %vm86_vm0, %v60_v30 }
  0x21   :  { %1078 = vmatmul.mubr.msk.f32.gmra.mrb[14].mxu0 %vm86_vm0, %v29_v31  ;;  %1126 = vmatmul.mubr.msk.f32.gmra.mrb[14].mxu1 %vm86_vm0, %v61_v32 }
  0x22   :  { %1080 = vmatprep.mubr.msk.f32.mxu0 %vm86_vm0, %v30_v33  ;;  %1128 = vmatprep.mubr.msk.f32.mxu1 %vm86_vm0, %v62_v34 }
  0x25   :  { %1081 = vmatmul.mubr.msk.f32.gmra.mrb[16].mxu0 %vm86_vm0, %v31_v35  ;;  %1129 = vmatmul.mubr.msk.f32.gmra.mrb[16].mxu1 %vm86_vm0, %v63_v36 }
  0x26   :  { %1083 = vmatprep.mubr.msk.f32.mxu0 %vm86_vm0, %v32_v37  ;;  %1131 = vmatprep.mubr.msk.f32.mxu1 %vm86_vm0, %v64_v38 }
  0x29   :  { %1084 = vmatmul.mubr.msk.f32.gmra.mrb[18].mxu0 %vm86_vm0, %v33_v39  ;;  %1132 = vmatmul.mubr.msk.f32.gmra.mrb[18].mxu1 %vm86_vm0, %v65_v40 }
  0x2a   :  { %1086 = vmatprep.mubr.msk.f32.mxu0 %vm86_vm0, %v34_v41  ;;  %1134 = vmatprep.mubr.msk.f32.mxu1 %vm86_vm0, %v66_v42 }
  0x2d   :  { %1087 = vmatmul.mubr.msk.f32.gmra.mrb[20].mxu0 %vm86_vm0, %v35_v43  ;;  %1135 = vmatmul.mubr.msk.f32.gmra.mrb[20].mxu1 %vm86_vm0, %v67_v44 }
  0x2e   :  { %1089 = vmatprep.mubr.msk.f32.mxu0 %vm86_vm0, %v36_v45  ;;  %1137 = vmatprep.mubr.msk.f32.mxu1 %vm86_vm0, %v68_v46 }
  0x31   :  { %1090 = vmatmul.mubr.msk.f32.gmra.mrb[22].mxu0 %vm86_vm0, %v37_v47  ;;  %1138 = vmatmul.mubr.msk.f32.gmra.mrb[22].mxu1 %vm86_vm0, %v69_v48 }
  0x32   :  { %1092 = vmatprep.mubr.msk.f32.mxu0 %vm86_vm0, %v38_v49  ;;  %1140 = vmatprep.mubr.msk.f32.mxu1 %vm86_vm0, %v70_v50 }
  0x35   :  { %1093 = vmatmul.mubr.msk.f32.gmra.mrb[24].mxu0 %vm86_vm0, %v39_v51  ;;  %1141 = vmatmul.mubr.msk.f32.gmra.mrb[24].mxu1 %vm86_vm0, %v71_v52 }
  0x36   :  { %1095 = vmatprep.mubr.msk.f32.mxu0 %vm86_vm0, %v40_v53  ;;  %1143 = vmatprep.mubr.msk.f32.mxu1 %vm86_vm0, %v72_v54 }
  0x39   :  { %1096 = vmatmul.mubr.msk.f32.gmra.mrb[26].mxu0 %vm86_vm0, %v41_v55  ;;  %1144 = vmatmul.mubr.msk.f32.gmra.mrb[26].mxu1 %vm86_vm0, %v73_v56 }
  0x3a   :  { %1098 = vmatprep.mubr.msk.f32.mxu0 %vm86_vm0, %v42_v57  ;;  %1146 = vmatprep.mubr.msk.f32.mxu1 %vm86_vm0, %v74_v58 }
  0x3d   :  { %1099 = vmatmul.mubr.msk.f32.gmra.mrb[28].mxu0 %vm86_vm0, %v43_v59  ;;  %1147 = vmatmul.mubr.msk.f32.gmra.mrb[28].mxu1 %vm86_vm0, %v75_v60 }
  0x3e   :  { %1101 = vmatprep.mubr.msk.f32.mxu0 %vm86_vm0, %v44_v61  ;;  %1149 = vmatprep.mubr.msk.f32.mxu1 %vm86_vm0, %v76_v62 }
  0x41   :  { %1102 = vmatmul.mubr.msk.f32.gmra.mrb[30].mxu0 %vm86_vm0, %v45_v63  ;;  %1150 = vmatmul.mubr.msk.f32.gmra.mrb[30].mxu1 %vm86_vm0, %v77_v0 }
  0xd8   :  { %v1058_v2 = vpop.f32.mrb[0].mxu0  ;;  %v1106_v3 = vpop.f32.mrb[0].mxu1 }
  0xd9   :  { %v351_v4 = vadd.f32 %v1058_v2, %v1436_v1  ;;  %v511_v5 = vadd.f32 %v1106_v3, %v1436_v1  ;;  %v345_v6 = vpop.f32.mrb[1].mxu0  ;;  %v505_v7 = vpop.f32.mrb[1].mxu1 }
  0xda   :  { %v346_v8 = vadd.f32 %v1436_v1, %v345_v6  ;;  %v506_v9 = vadd.f32 %v1436_v1, %v505_v7 }
  0xdb   :  { %vm665_vm1 = vcmp.ge.f32.partialorder %v351_v4, 0.0  ;;  %v729_v10 = vmul.f32 0.01, %v351_v4  ;;  %vm697_vm2 = vcmp.ge.f32.partialorder %v511_v5, 0.0  ;;  %v761_v11 = vmul.f32 0.01, %v511_v5 }
  0xdc   :  { %vm664_vm3 = vcmp.ge.f32.partialorder %v346_v8, 0.0  ;;  %v728_v12 = vmul.f32 0.01, %v346_v8  ;;  %vm696_vm4 = vcmp.ge.f32.partialorder %v506_v9, 0.0  ;;  %v760_v13 = vmul.f32 0.01, %v506_v9 }
  0xdd   :  { %v793_v14 = vsel %vm665_vm1, %v351_v4, %v729_v10  ;;  %v825_v15 = vsel %vm697_vm2, %v511_v5, %v761_v11  ;;  %v1061_v16 = vpop.f32.mrb[2].mxu0  ;;  %v1109_v17 = vpop.f32.mrb[2].mxu1 }
  0xde   :  { %857 = vst [vmem:[%s1697_s3 + $0x8] sm:$0xff] %v793_v14  ;;  %889 = vst [vmem:[%s1697_s3 + $0x108] sm:$0xff] %v825_v15  ;;  %v792_v18 = vsel %vm664_vm3, %v346_v8, %v728_v12  ;;  %v824_v19 = vsel %vm696_vm4, %v506_v9, %v760_v13  ;;  %v361_v20 = vadd.f32 %v1061_v16, %v1436_v1  ;;  %v355_v22 = vpop.f32.mrb[3].mxu0  ;;  %v515_v23 = vpop.f32.mrb[3].mxu1 }
  0xdf   :  { %v521_v21 = vadd.f32 %v1109_v17, %v1436_v1  ;;  %856 = vst [vmem:[%s1697_s3] sm:$0xff] %v792_v18  ;;  %888 = vst [vmem:[%s1697_s3 + $0x100] sm:$0xff] %v824_v19  ;;  %v356_v24 = vadd.f32 %v1436_v1, %v355_v22  ;;  %v516_v25 = vadd.f32 %v1436_v1, %v515_v23 }
  0xe0   :  { %vm667_vm5 = vcmp.ge.f32.partialorder %v361_v20, 0.0  ;;  %v731_v26 = vmul.f32 0.01, %v361_v20  ;;  %v1064_v32 = vpop.f32.mrb[4].mxu0  ;;  %v1112_v33 = vpop.f32.mrb[4].mxu1 }
  0xe1   :  { %vm699_vm6 = vcmp.ge.f32.partialorder %v521_v21, 0.0  ;;  %v763_v27 = vmul.f32 0.01, %v521_v21  ;;  %vm666_vm7 = vcmp.ge.f32.partialorder %v356_v24, 0.0  ;;  %v730_v28 = vmul.f32 0.01, %v356_v24 }
  0xe2   :  { %vm698_vm8 = vcmp.ge.f32.partialorder %v516_v25, 0.0  ;;  %v762_v29 = vmul.f32 0.01, %v516_v25  ;;  %v795_v30 = vsel %vm667_vm5, %v361_v20, %v731_v26  ;;  %v371_v36 = vadd.f32 %v1064_v32, %v1436_v1  ;;  %v365_v38 = vpop.f32.mrb[5].mxu0  ;;  %v525_v39 = vpop.f32.mrb[5].mxu1 }
  0xe3   :  { %v827_v31 = vsel %vm699_vm6, %v521_v21, %v763_v27  ;;  %859 = vst [vmem:[%s1697_s3 + $0x18] sm:$0xff] %v795_v30  ;;  %v794_v34 = vsel %vm666_vm7, %v356_v24, %v730_v28  ;;  %v531_v37 = vadd.f32 %v1112_v33, %v1436_v1  ;;  %v366_v40 = vadd.f32 %v1436_v1, %v365_v38 }
  0xe4   :  { %891 = vst [vmem:[%s1697_s3 + $0x118] sm:$0xff] %v827_v31  ;;  %v826_v35 = vsel %vm698_vm8, %v516_v25, %v762_v29  ;;  %858 = vst [vmem:[%s1697_s3 + $0x10] sm:$0xff] %v794_v34  ;;  %v526_v41 = vadd.f32 %v1436_v1, %v525_v39  ;;  %v1067_v42 = vpop.f32.mrb[6].mxu0  ;;  %v1115_v43 = vpop.f32.mrb[6].mxu1  ;;  %vm669_vm9 = vcmp.ge.f32.partialorder %v371_v36, 0.0 }
  0xe5   :  { %890 = vst [vmem:[%s1697_s3 + $0x110] sm:$0xff] %v826_v35  ;;  %v733_v44 = vmul.f32 0.01, %v371_v36  ;;  %vm701_vm10 = vcmp.ge.f32.partialorder %v531_v37, 0.0  ;;  %v765_v45 = vmul.f32 0.01, %v531_v37  ;;  %v381_v50 = vadd.f32 %v1067_v42, %v1436_v1 }
  0xe6   :  { %vm668_vm11 = vcmp.ge.f32.partialorder %v366_v40, 0.0  ;;  %v732_v46 = vmul.f32 0.01, %v366_v40  ;;  %vm700_vm12 = vcmp.ge.f32.partialorder %v526_v41, 0.0  ;;  %v764_v47 = vmul.f32 0.01, %v526_v41 }
  0xe7   :  { %v797_v48 = vsel %vm669_vm9, %v371_v36, %v733_v44  ;;  %v829_v49 = vsel %vm701_vm10, %v531_v37, %v765_v45  ;;  %v541_v51 = vadd.f32 %v1115_v43, %v1436_v1  ;;  %v375_v52 = vpop.f32.mrb[7].mxu0  ;;  %v535_v53 = vpop.f32.mrb[7].mxu1  ;;  %vm671_vm13 = vcmp.ge.f32.partialorder %v381_v50, 0.0 }
  0xe8   :  { %861 = vst [vmem:[%s1697_s3 + $0x28] sm:$0xff] %v797_v48  ;;  %893 = vst [vmem:[%s1697_s3 + $0x128] sm:$0xff] %v829_v49  ;;  %v796_v54 = vsel %vm668_vm11, %v366_v40, %v732_v46  ;;  %v828_v55 = vsel %vm700_vm12, %v526_v41, %v764_v47  ;;  %v376_v56 = vadd.f32 %v1436_v1, %v375_v52  ;;  %v1070_v58 = vpop.f32.mrb[8].mxu0  ;;  %v1118_v59 = vpop.f32.mrb[8].mxu1  ;;  %v735_v60 = vmul.f32 0.01, %v381_v50 }
  0xe9   :  { %v536_v57 = vadd.f32 %v1436_v1, %v535_v53  ;;  %860 = vst [vmem:[%s1697_s3 + $0x20] sm:$0xff] %v796_v54  ;;  %892 = vst [vmem:[%s1697_s3 + $0x120] sm:$0xff] %v828_v55  ;;  %vm703_vm14 = vcmp.ge.f32.partialorder %v541_v51, 0.0  ;;  %v767_v61 = vmul.f32 0.01, %v541_v51  ;;  %v391_v3 = vadd.f32 %v1070_v58, %v1436_v1  ;;  %v385_v5 = vpop.f32.mrb[9].mxu0 }
  0xea   :  { %vm670_vm15 = vcmp.ge.f32.partialorder %v376_v56, 0.0  ;;  %v734_v62 = vmul.f32 0.01, %v376_v56  ;;  %v799_v0 = vsel %vm671_vm13, %v381_v50, %v735_v60  ;;  %v551_v4 = vadd.f32 %v1118_v59, %v1436_v1  ;;  %v545_v6 = vpop.f32.mrb[9].mxu1 }
  0xeb   :  { %vm702_vm0 = vcmp.ge.f32.partialorder %v536_v57, 0.0  ;;  %v766_v63 = vmul.f32 0.01, %v536_v57  ;;  %v831_v2 = vsel %vm703_vm14, %v541_v51, %v767_v61  ;;  %863 = vst [vmem:[%s1697_s3 + $0x38] sm:$0xff] %v799_v0  ;;  %v386_v9 = vadd.f32 %v1436_v1, %v385_v5 }
  0xec   :  { %895 = vst [vmem:[%s1697_s3 + $0x138] sm:$0xff] %v831_v2  ;;  %v798_v7 = vsel %vm670_vm15, %v376_v56, %v734_v62  ;;  %v546_v10 = vadd.f32 %v1436_v1, %v545_v6  ;;  %v1073_v11 = vpop.f32.mrb[10].mxu0  ;;  %v1121_v12 = vpop.f32.mrb[10].mxu1  ;;  %vm673_vm1 = vcmp.ge.f32.partialorder %v391_v3, 0.0  ;;  %v737_v13 = vmul.f32 0.01, %v391_v3 }
  0xed   :  { %v830_v8 = vsel %vm702_vm0, %v536_v57, %v766_v63  ;;  %862 = vst [vmem:[%s1697_s3 + $0x30] sm:$0xff] %v798_v7  ;;  %vm705_vm2 = vcmp.ge.f32.partialorder %v551_v4, 0.0  ;;  %v769_v14 = vmul.f32 0.01, %v551_v4  ;;  %vm672_vm3 = vcmp.ge.f32.partialorder %v386_v9, 0.0  ;;  %v395_v21 = vpop.f32.mrb[11].mxu0 }
  0xee   :  { %894 = vst [vmem:[%s1697_s3 + $0x130] sm:$0xff] %v830_v8  ;;  %v736_v15 = vmul.f32 0.01, %v386_v9  ;;  %vm704_vm4 = vcmp.ge.f32.partialorder %v546_v10, 0.0  ;;  %v768_v16 = vmul.f32 0.01, %v546_v10  ;;  %v801_v17 = vsel %vm673_vm1, %v391_v3, %v737_v13 }
  0xef   :  { %v833_v18 = vsel %vm705_vm2, %v551_v4, %v769_v14  ;;  %v401_v19 = vadd.f32 %v1073_v11, %v1436_v1  ;;  %v561_v20 = vadd.f32 %v1121_v12, %v1436_v1  ;;  %v555_v22 = vpop.f32.mrb[11].mxu1  ;;  %865 = vst [vmem:[%s1697_s3 + $0x48] sm:$0xff] %v801_v17  ;;  %v396_v25 = vadd.f32 %v1436_v1, %v395_v21 }
  0xf0   :  { %897 = vst [vmem:[%s1697_s3 + $0x148] sm:$0xff] %v833_v18  ;;  %v800_v23 = vsel %vm672_vm3, %v386_v9, %v736_v15  ;;  %v832_v24 = vsel %vm704_vm4, %v546_v10, %v768_v16  ;;  %v556_v26 = vadd.f32 %v1436_v1, %v555_v22  ;;  %v1076_v27 = vpop.f32.mrb[12].mxu0  ;;  %v1124_v28 = vpop.f32.mrb[12].mxu1 }
  0xf1   :  { %864 = vst [vmem:[%s1697_s3 + $0x40] sm:$0xff] %v800_v23  ;;  %896 = vst [vmem:[%s1697_s3 + $0x140] sm:$0xff] %v832_v24  ;;  %vm675_vm5 = vcmp.ge.f32.partialorder %v401_v19, 0.0  ;;  %v739_v29 = vmul.f32 0.01, %v401_v19  ;;  %vm707_vm6 = vcmp.ge.f32.partialorder %v561_v20, 0.0  ;;  %v411_v35 = vadd.f32 %v1076_v27, %v1436_v1 }
  0xf2   :  { %v771_v30 = vmul.f32 0.01, %v561_v20  ;;  %vm674_vm7 = vcmp.ge.f32.partialorder %v396_v25, 0.0  ;;  %v738_v31 = vmul.f32 0.01, %v396_v25  ;;  %vm706_vm8 = vcmp.ge.f32.partialorder %v556_v26, 0.0 }
  0xf3   :  { %v770_v32 = vmul.f32 0.01, %v556_v26  ;;  %v803_v33 = vsel %vm675_vm5, %v401_v19, %v739_v29  ;;  %v571_v36 = vadd.f32 %v1124_v28, %v1436_v1  ;;  %v405_v37 = vpop.f32.mrb[13].mxu0  ;;  %v565_v38 = vpop.f32.mrb[13].mxu1  ;;  %vm677_vm9 = vcmp.ge.f32.partialorder %v411_v35, 0.0 }
  0xf4   :  { %v835_v34 = vsel %vm707_vm6, %v561_v20, %v771_v30  ;;  %867 = vst [vmem:[%s1697_s3 + $0x58] sm:$0xff] %v803_v33  ;;  %v802_v39 = vsel %vm674_vm7, %v396_v25, %v738_v31  ;;  %v406_v41 = vadd.f32 %v1436_v1, %v405_v37  ;;  %v566_v42 = vadd.f32 %v1436_v1, %v565_v38  ;;  %v1079_v43 = vpop.f32.mrb[14].mxu0  ;;  %v1127_v44 = vpop.f32.mrb[14].mxu1 }
  0xf5   :  { %899 = vst [vmem:[%s1697_s3 + $0x158] sm:$0xff] %v835_v34  ;;  %v834_v40 = vsel %vm706_vm8, %v556_v26, %v770_v32  ;;  %866 = vst [vmem:[%s1697_s3 + $0x50] sm:$0xff] %v802_v39  ;;  %v741_v45 = vmul.f32 0.01, %v411_v35  ;;  %vm709_vm10 = vcmp.ge.f32.partialorder %v571_v36, 0.0  ;;  %v421_v51 = vadd.f32 %v1079_v43, %v1436_v1  ;;  %v415_v53 = vpop.f32.mrb[15].mxu0 }
  0xf6   :  { %898 = vst [vmem:[%s1697_s3 + $0x150] sm:$0xff] %v834_v40  ;;  %v773_v46 = vmul.f32 0.01, %v571_v36  ;;  %vm676_vm11 = vcmp.ge.f32.partialorder %v406_v41, 0.0  ;;  %v740_v47 = vmul.f32 0.01, %v406_v41  ;;  %v581_v52 = vadd.f32 %v1127_v44, %v1436_v1 }
  0xf7   :  { %vm708_vm12 = vcmp.ge.f32.partialorder %v566_v42, 0.0  ;;  %v772_v48 = vmul.f32 0.01, %v566_v42  ;;  %v805_v49 = vsel %vm677_vm9, %v411_v35, %v741_v45  ;;  %v575_v54 = vpop.f32.mrb[15].mxu1  ;;  %v416_v57 = vadd.f32 %v1436_v1, %v415_v53 }
  0xf8   :  { %v837_v50 = vsel %vm709_vm10, %v571_v36, %v773_v46  ;;  %869 = vst [vmem:[%s1697_s3 + $0x68] sm:$0xff] %v805_v49  ;;  %v804_v55 = vsel %vm676_vm11, %v406_v41, %v740_v47  ;;  %v576_v58 = vadd.f32 %v1436_v1, %v575_v54  ;;  %v1082_v59 = vpop.f32.mrb[16].mxu0  ;;  %v1130_v60 = vpop.f32.mrb[16].mxu1  ;;  %vm679_vm13 = vcmp.ge.f32.partialorder %v421_v51, 0.0 }
  0xf9   :  { %901 = vst [vmem:[%s1697_s3 + $0x168] sm:$0xff] %v837_v50  ;;  %v836_v56 = vsel %vm708_vm12, %v566_v42, %v772_v48  ;;  %868 = vst [vmem:[%s1697_s3 + $0x60] sm:$0xff] %v804_v55  ;;  %v743_v61 = vmul.f32 0.01, %v421_v51  ;;  %vm711_vm14 = vcmp.ge.f32.partialorder %v581_v52, 0.0  ;;  %vm678_vm15 = vcmp.ge.f32.partialorder %v416_v57, 0.0 }
  0xfa   :  { %900 = vst [vmem:[%s1697_s3 + $0x160] sm:$0xff] %v836_v56  ;;  %v775_v62 = vmul.f32 0.01, %v581_v52  ;;  %v742_v63 = vmul.f32 0.01, %v416_v57  ;;  %vm710_vm0 = vcmp.ge.f32.partialorder %v576_v58, 0.0  ;;  %v431_v4 = vadd.f32 %v1082_v59, %v1436_v1 }
  0xfb   :  { %v774_v0 = vmul.f32 0.01, %v576_v58  ;;  %v807_v2 = vsel %vm679_vm13, %v421_v51, %v743_v61  ;;  %v591_v5 = vadd.f32 %v1130_v60, %v1436_v1  ;;  %v425_v6 = vpop.f32.mrb[17].mxu0  ;;  %v585_v7 = vpop.f32.mrb[17].mxu1 }
  0xfc   :  { %v839_v3 = vsel %vm711_vm14, %v581_v52, %v775_v62  ;;  %871 = vst [vmem:[%s1697_s3 + $0x78] sm:$0xff] %v807_v2  ;;  %v806_v8 = vsel %vm678_vm15, %v416_v57, %v742_v63  ;;  %v426_v10 = vadd.f32 %v1436_v1, %v425_v6  ;;  %v586_v11 = vadd.f32 %v1436_v1, %v585_v7  ;;  %v1085_v12 = vpop.f32.mrb[18].mxu0  ;;  %v1133_v13 = vpop.f32.mrb[18].mxu1 }
  0xfd   :  { %903 = vst [vmem:[%s1697_s3 + $0x178] sm:$0xff] %v839_v3  ;;  %v838_v9 = vsel %vm710_vm0, %v576_v58, %v774_v0  ;;  %870 = vst [vmem:[%s1697_s3 + $0x70] sm:$0xff] %v806_v8  ;;  %vm681_vm1 = vcmp.ge.f32.partialorder %v431_v4, 0.0  ;;  %v745_v14 = vmul.f32 0.01, %v431_v4  ;;  %vm713_vm2 = vcmp.ge.f32.partialorder %v591_v5, 0.0 }
  0xfe   :  { %902 = vst [vmem:[%s1697_s3 + $0x170] sm:$0xff] %v838_v9  ;;  %v777_v15 = vmul.f32 0.01, %v591_v5  ;;  %vm680_vm3 = vcmp.ge.f32.partialorder %v426_v10, 0.0  ;;  %v744_v16 = vmul.f32 0.01, %v426_v10  ;;  %v441_v20 = vadd.f32 %v1085_v12, %v1436_v1 }
  0xff   :  { %vm712_vm4 = vcmp.ge.f32.partialorder %v586_v11, 0.0  ;;  %v776_v17 = vmul.f32 0.01, %v586_v11  ;;  %v809_v18 = vsel %vm681_vm1, %v431_v4, %v745_v14  ;;  %v601_v21 = vadd.f32 %v1133_v13, %v1436_v1  ;;  %v435_v22 = vpop.f32.mrb[19].mxu0  ;;  %v595_v23 = vpop.f32.mrb[19].mxu1 }
 0x100   :  { %v841_v19 = vsel %vm713_vm2, %v591_v5, %v777_v15  ;;  %873 = vst [vmem:[%s1697_s3 + $0x88] sm:$0xff] %v809_v18  ;;  %v808_v24 = vsel %vm680_vm3, %v426_v10, %v744_v16  ;;  %v436_v26 = vadd.f32 %v1436_v1, %v435_v22  ;;  %v596_v27 = vadd.f32 %v1436_v1, %v595_v23  ;;  %v1088_v28 = vpop.f32.mrb[20].mxu0  ;;  %v1136_v29 = vpop.f32.mrb[20].mxu1 }
 0x101   :  { %905 = vst [vmem:[%s1697_s3 + $0x188] sm:$0xff] %v841_v19  ;;  %v840_v25 = vsel %vm712_vm4, %v586_v11, %v776_v17  ;;  %872 = vst [vmem:[%s1697_s3 + $0x80] sm:$0xff] %v808_v24  ;;  %vm683_vm5 = vcmp.ge.f32.partialorder %v441_v20, 0.0  ;;  %v747_v30 = vmul.f32 0.01, %v441_v20  ;;  %vm715_vm6 = vcmp.ge.f32.partialorder %v601_v21, 0.0 }
 0x102   :  { %904 = vst [vmem:[%s1697_s3 + $0x180] sm:$0xff] %v840_v25  ;;  %v779_v31 = vmul.f32 0.01, %v601_v21  ;;  %vm682_vm7 = vcmp.ge.f32.partialorder %v436_v26, 0.0  ;;  %v746_v32 = vmul.f32 0.01, %v436_v26  ;;  %v451_v36 = vadd.f32 %v1088_v28, %v1436_v1 }
 0x103   :  { %vm714_vm8 = vcmp.ge.f32.partialorder %v596_v27, 0.0  ;;  %v778_v33 = vmul.f32 0.01, %v596_v27  ;;  %v811_v34 = vsel %vm683_vm5, %v441_v20, %v747_v30  ;;  %v611_v37 = vadd.f32 %v1136_v29, %v1436_v1  ;;  %v445_v38 = vpop.f32.mrb[21].mxu0  ;;  %v605_v39 = vpop.f32.mrb[21].mxu1 }
 0x104   :  { %v843_v35 = vsel %vm715_vm6, %v601_v21, %v779_v31  ;;  %875 = vst [vmem:[%s1697_s3 + $0x98] sm:$0xff] %v811_v34  ;;  %v810_v40 = vsel %vm682_vm7, %v436_v26, %v746_v32  ;;  %v446_v42 = vadd.f32 %v1436_v1, %v445_v38  ;;  %v606_v43 = vadd.f32 %v1436_v1, %v605_v39  ;;  %v1091_v44 = vpop.f32.mrb[22].mxu0  ;;  %v1139_v45 = vpop.f32.mrb[22].mxu1 }
 0x105   :  { %907 = vst [vmem:[%s1697_s3 + $0x198] sm:$0xff] %v843_v35  ;;  %v842_v41 = vsel %vm714_vm8, %v596_v27, %v778_v33  ;;  %874 = vst [vmem:[%s1697_s3 + $0x90] sm:$0xff] %v810_v40  ;;  %vm685_vm9 = vcmp.ge.f32.partialorder %v451_v36, 0.0  ;;  %v749_v46 = vmul.f32 0.01, %v451_v36  ;;  %vm717_vm10 = vcmp.ge.f32.partialorder %v611_v37, 0.0 }
 0x106   :  { %906 = vst [vmem:[%s1697_s3 + $0x190] sm:$0xff] %v842_v41  ;;  %v781_v47 = vmul.f32 0.01, %v611_v37  ;;  %vm684_vm11 = vcmp.ge.f32.partialorder %v446_v42, 0.0  ;;  %v748_v48 = vmul.f32 0.01, %v446_v42  ;;  %v461_v52 = vadd.f32 %v1091_v44, %v1436_v1 }
 0x107   :  { %vm716_vm12 = vcmp.ge.f32.partialorder %v606_v43, 0.0  ;;  %v780_v49 = vmul.f32 0.01, %v606_v43  ;;  %v813_v50 = vsel %vm685_vm9, %v451_v36, %v749_v46  ;;  %v621_v53 = vadd.f32 %v1139_v45, %v1436_v1  ;;  %v455_v54 = vpop.f32.mrb[23].mxu0  ;;  %v615_v55 = vpop.f32.mrb[23].mxu1 }
 0x108   :  { %v845_v51 = vsel %vm717_vm10, %v611_v37, %v781_v47  ;;  %877 = vst [vmem:[%s1697_s3 + $0xa8] sm:$0xff] %v813_v50  ;;  %v812_v56 = vsel %vm684_vm11, %v446_v42, %v748_v48  ;;  %v456_v58 = vadd.f32 %v1436_v1, %v455_v54  ;;  %v616_v59 = vadd.f32 %v1436_v1, %v615_v55  ;;  %v1094_v60 = vpop.f32.mrb[24].mxu0  ;;  %v1142_v61 = vpop.f32.mrb[24].mxu1 }
 0x109   :  { %909 = vst [vmem:[%s1697_s3 + $0x1a8] sm:$0xff] %v845_v51  ;;  %v844_v57 = vsel %vm716_vm12, %v606_v43, %v780_v49  ;;  %876 = vst [vmem:[%s1697_s3 + $0xa0] sm:$0xff] %v812_v56  ;;  %vm687_vm13 = vcmp.ge.f32.partialorder %v461_v52, 0.0  ;;  %v751_v62 = vmul.f32 0.01, %v461_v52  ;;  %vm719_vm14 = vcmp.ge.f32.partialorder %v621_v53, 0.0 }
 0x10a   :  { %908 = vst [vmem:[%s1697_s3 + $0x1a0] sm:$0xff] %v844_v57  ;;  %v783_v63 = vmul.f32 0.01, %v621_v53  ;;  %vm686_vm15 = vcmp.ge.f32.partialorder %v456_v58, 0.0  ;;  %v750_v0 = vmul.f32 0.01, %v456_v58  ;;  %v471_v5 = vadd.f32 %v1094_v60, %v1436_v1 }
 0x10b   :  { %vm718_vm0 = vcmp.ge.f32.partialorder %v616_v59, 0.0  ;;  %v782_v2 = vmul.f32 0.01, %v616_v59  ;;  %v815_v3 = vsel %vm687_vm13, %v461_v52, %v751_v62  ;;  %v631_v6 = vadd.f32 %v1142_v61, %v1436_v1  ;;  %v465_v7 = vpop.f32.mrb[25].mxu0  ;;  %v625_v8 = vpop.f32.mrb[25].mxu1 }
 0x10c   :  { %v847_v4 = vsel %vm719_vm14, %v621_v53, %v783_v63  ;;  %879 = vst [vmem:[%s1697_s3 + $0xb8] sm:$0xff] %v815_v3  ;;  %v814_v9 = vsel %vm686_vm15, %v456_v58, %v750_v0  ;;  %v466_v11 = vadd.f32 %v1436_v1, %v465_v7  ;;  %v626_v12 = vadd.f32 %v1436_v1, %v625_v8  ;;  %v1097_v13 = vpop.f32.mrb[26].mxu0  ;;  %v1145_v14 = vpop.f32.mrb[26].mxu1 }
 0x10d   :  { %911 = vst [vmem:[%s1697_s3 + $0x1b8] sm:$0xff] %v847_v4  ;;  %v846_v10 = vsel %vm718_vm0, %v616_v59, %v782_v2  ;;  %878 = vst [vmem:[%s1697_s3 + $0xb0] sm:$0xff] %v814_v9  ;;  %vm689_vm1 = vcmp.ge.f32.partialorder %v471_v5, 0.0  ;;  %v753_v15 = vmul.f32 0.01, %v471_v5  ;;  %vm721_vm2 = vcmp.ge.f32.partialorder %v631_v6, 0.0 }
 0x10e   :  { %910 = vst [vmem:[%s1697_s3 + $0x1b0] sm:$0xff] %v846_v10  ;;  %v785_v16 = vmul.f32 0.01, %v631_v6  ;;  %vm688_vm3 = vcmp.ge.f32.partialorder %v466_v11, 0.0  ;;  %v752_v17 = vmul.f32 0.01, %v466_v11  ;;  %v481_v21 = vadd.f32 %v1097_v13, %v1436_v1 }
 0x10f   :  { %vm720_vm4 = vcmp.ge.f32.partialorder %v626_v12, 0.0  ;;  %v784_v18 = vmul.f32 0.01, %v626_v12  ;;  %v817_v19 = vsel %vm689_vm1, %v471_v5, %v753_v15  ;;  %v641_v22 = vadd.f32 %v1145_v14, %v1436_v1  ;;  %v475_v23 = vpop.f32.mrb[27].mxu0  ;;  %v635_v24 = vpop.f32.mrb[27].mxu1 }
 0x110   :  { %v849_v20 = vsel %vm721_vm2, %v631_v6, %v785_v16  ;;  %881 = vst [vmem:[%s1697_s3 + $0xc8] sm:$0xff] %v817_v19  ;;  %v816_v25 = vsel %vm688_vm3, %v466_v11, %v752_v17  ;;  %v476_v27 = vadd.f32 %v1436_v1, %v475_v23  ;;  %v636_v28 = vadd.f32 %v1436_v1, %v635_v24  ;;  %v1100_v29 = vpop.f32.mrb[28].mxu0  ;;  %v1148_v30 = vpop.f32.mrb[28].mxu1 }
 0x111   :  { %913 = vst [vmem:[%s1697_s3 + $0x1c8] sm:$0xff] %v849_v20  ;;  %v848_v26 = vsel %vm720_vm4, %v626_v12, %v784_v18  ;;  %880 = vst [vmem:[%s1697_s3 + $0xc0] sm:$0xff] %v816_v25  ;;  %vm691_vm5 = vcmp.ge.f32.partialorder %v481_v21, 0.0  ;;  %v755_v31 = vmul.f32 0.01, %v481_v21  ;;  %vm723_vm6 = vcmp.ge.f32.partialorder %v641_v22, 0.0 }
 0x112   :  { %912 = vst [vmem:[%s1697_s3 + $0x1c0] sm:$0xff] %v848_v26  ;;  %v787_v32 = vmul.f32 0.01, %v641_v22  ;;  %vm690_vm7 = vcmp.ge.f32.partialorder %v476_v27, 0.0  ;;  %v754_v33 = vmul.f32 0.01, %v476_v27  ;;  %v491_v37 = vadd.f32 %v1100_v29, %v1436_v1 }
 0x113   :  { %vm722_vm8 = vcmp.ge.f32.partialorder %v636_v28, 0.0  ;;  %v786_v34 = vmul.f32 0.01, %v636_v28  ;;  %v819_v35 = vsel %vm691_vm5, %v481_v21, %v755_v31  ;;  %v651_v38 = vadd.f32 %v1148_v30, %v1436_v1  ;;  %v485_v39 = vpop.f32.mrb[29].mxu0  ;;  %v645_v40 = vpop.f32.mrb[29].mxu1 }
 0x114   :  { %v851_v36 = vsel %vm723_vm6, %v641_v22, %v787_v32  ;;  %883 = vst [vmem:[%s1697_s3 + $0xd8] sm:$0xff] %v819_v35  ;;  %v818_v41 = vsel %vm690_vm7, %v476_v27, %v754_v33  ;;  %v486_v43 = vadd.f32 %v1436_v1, %v485_v39  ;;  %v646_v44 = vadd.f32 %v1436_v1, %v645_v40  ;;  %v1103_v45 = vpop.f32.mrb[30].mxu0  ;;  %v1151_v46 = vpop.f32.mrb[30].mxu1 }
 0x115   :  { %915 = vst [vmem:[%s1697_s3 + $0x1d8] sm:$0xff] %v851_v36  ;;  %v850_v42 = vsel %vm722_vm8, %v636_v28, %v786_v34  ;;  %882 = vst [vmem:[%s1697_s3 + $0xd0] sm:$0xff] %v818_v41  ;;  %vm693_vm9 = vcmp.ge.f32.partialorder %v491_v37, 0.0  ;;  %v757_v47 = vmul.f32 0.01, %v491_v37  ;;  %vm725_vm10 = vcmp.ge.f32.partialorder %v651_v38, 0.0 }
 0x116   :  { %914 = vst [vmem:[%s1697_s3 + $0x1d0] sm:$0xff] %v850_v42  ;;  %v789_v48 = vmul.f32 0.01, %v651_v38  ;;  %vm692_vm11 = vcmp.ge.f32.partialorder %v486_v43, 0.0  ;;  %v756_v49 = vmul.f32 0.01, %v486_v43  ;;  %v501_v53 = vadd.f32 %v1103_v45, %v1436_v1 }
 0x117   :  { %vm724_vm12 = vcmp.ge.f32.partialorder %v646_v44, 0.0  ;;  %v788_v50 = vmul.f32 0.01, %v646_v44  ;;  %v821_v51 = vsel %vm693_vm9, %v491_v37, %v757_v47  ;;  %v661_v54 = vadd.f32 %v1151_v46, %v1436_v1  ;;  %v495_v55 = vpop.f32.mrb[31].mxu0  ;;  %v655_v56 = vpop.f32.mrb[31].mxu1 }
 0x118   :  { %v853_v52 = vsel %vm725_vm10, %v651_v38, %v789_v48  ;;  %885 = vst [vmem:[%s1697_s3 + $0xe8] sm:$0xff] %v821_v51  ;;  %v820_v57 = vsel %vm692_vm11, %v486_v43, %v756_v49  ;;  %v496_v59 = vadd.f32 %v1436_v1, %v495_v55  ;;  %v656_v60 = vadd.f32 %v1436_v1, %v655_v56 }
 0x119   :  { %917 = vst [vmem:[%s1697_s3 + $0x1e8] sm:$0xff] %v853_v52  ;;  %v852_v58 = vsel %vm724_vm12, %v646_v44, %v788_v50  ;;  %884 = vst [vmem:[%s1697_s3 + $0xe0] sm:$0xff] %v820_v57  ;;  %vm695_vm13 = vcmp.ge.f32.partialorder %v501_v53, 0.0  ;;  %v759_v61 = vmul.f32 0.01, %v501_v53  ;;  %vm727_vm14 = vcmp.ge.f32.partialorder %v661_v54, 0.0 }
 0x11a   :  { %916 = vst [vmem:[%s1697_s3 + $0x1e0] sm:$0xff] %v852_v58  ;;  %v791_v62 = vmul.f32 0.01, %v661_v54  ;;  %vm694_vm15 = vcmp.ge.f32.partialorder %v496_v59, 0.0  ;;  %v758_v63 = vmul.f32 0.01, %v496_v59 }
 0x11b   :  { %vm726_vm0 = vcmp.ge.f32.partialorder %v656_v60, 0.0  ;;  %v790_v0 = vmul.f32 0.01, %v656_v60  ;;  %v823_v2 = vsel %vm695_vm13, %v501_v53, %v759_v61 }
 0x11c   :  { %v855_v3 = vsel %vm727_vm14, %v661_v54, %v791_v62  ;;  %887 = vst [vmem:[%s1697_s3 + $0xf8] sm:$0xff] %v823_v2  ;;  %v822_v1 = vsel %vm694_vm15, %v496_v59, %v758_v63 }
 0x11d   :  { %919 = vst [vmem:[%s1697_s3 + $0x1f8] sm:$0xff] %v855_v3  ;;  %v854_v4 = vsel %vm726_vm0, %v656_v60, %v790_v0  ;;  %886 = vst [vmem:[%s1697_s3 + $0xf0] sm:$0xff] %v822_v1 }
 0x11e   :  { %918 = vst [vmem:[%s1697_s3 + $0x1f0] sm:$0xff] %v854_v4 }

</bundles_post_ra>
